<compile_context>
chip_gen: v7x
topology: tpu7x:2x2x1
jax: 0.10.0
libtpu: 0.0.40
codegen_flags: <defaults>
</compile_context>

<pallas_src>
import jax
import jax.numpy as jnp
from jax.experimental import pallas as pl
from jax.experimental.pallas import tpu as pltpu

EPS = 1e-5
_LANE = 128
_SUBLANE = 8

_PIPELINE_FALLBACK_ERRORS = (TypeError, NotImplementedError, ValueError)
_lowering_exc = getattr(pltpu, "LoweringException", None)
if isinstance(_lowering_exc, type) and issubclass(_lowering_exc, Exception):
    _PIPELINE_FALLBACK_ERRORS = _PIPELINE_FALLBACK_ERRORS + (_lowering_exc,)


def _round_up(x, m):
    return (x + m - 1) // m * m


def _pad2(x, rows, cols):
    r, c = x.shape
    if r == rows and c == cols:
        return x
    return jnp.pad(x, ((0, rows - r), (0, cols - c)))


def _vmem_capacity_bytes():
    try:
        return int(pltpu.get_tpu_info().vmem_capacity_bytes)
    except Exception:
        return 64 << 20  # conservative (v7x per-TC)


def _choose_tm(n, tm_max):
    """Row tile height.

    Single grid step when it fits; otherwise the largest multiple-of-8 divisor
    of round_up(N, 8) that is <= tm_max (even grid, no row-padding copy).
    Never shrink below 128 just to split — accept row padding instead.
    """
    n8 = _round_up(max(n, _SUBLANE), _SUBLANE)
    tm_max = max(_SUBLANE, (tm_max // _SUBLANE) * _SUBLANE)
    if n8 <= tm_max:
        return n8                      # one step, tiny/odd N stays one tile
    for cand in range(tm_max, _SUBLANE - 1, -_SUBLANE):
        if n8 % cand == 0:
            if cand >= 128:
                return cand            # even multi-step grid, no row padding
            break
    return tm_max                      # ragged: pad rows, keep big MXU tiles


def _make_kernel(d_real):
    inv_d = 1.0 / float(d_real)

    def kernel(h_ref, u_ref, v_ref, w1_ref, b1_ref, w2_ref, b2_ref,
               gamma_ref, beta_ref, o_ref):
        # Hoist small broadcast operands once per body.
        b1 = b1_ref[...]
        b2 = b2_ref[...]
        gamma = gamma_ref[...]
        beta = beta_ref[...]

        # feed_forward: Linear(D,E) -> ReLU -> Linear(E,D) -> ReLU.
        # Operands may be bf16 (MXU-native); accumulation is f32.
        z1 = jnp.dot(h_ref[...], w1_ref[...],
                     preferred_element_type=jnp.float32) + b1       # (tm, Ep)
        z1 = jnp.maximum(z1, 0.0).astype(w2_ref.dtype)
        z = jnp.dot(z1, w2_ref[...],
                    preferred_element_type=jnp.float32) + b2        # (tm, Dp)
        z = jnp.maximum(z, 0.0)                                     # f32

        # Gate: padded feature columns of z / U / V are exactly 0 -> out is 0
        # there, so no column mask is ever needed.
        out = (1.0 - z) * u_ref[...] + z * v_ref[...]

        # LayerNorm over the real D columns (biased var, eps inside rsqrt).
        # Padded columns are exactly 0, so sums over d_pad == sums over d_real;
        # E[x^2] - mean^2 removes the old per-step iota/where mask + extra pass.
        mean = jnp.sum(out, axis=-1, keepdims=True) * inv_d
        sq = jnp.sum(out * out, axis=-1, keepdims=True) * inv_d
        var = jnp.maximum(sq - mean * mean, 0.0)
        xhat = (out - mean) * jax.lax.rsqrt(var + EPS)
        o_ref[...] = (xhat * gamma + beta).astype(o_ref.dtype)

    return kernel


def resblock_forward(H, U, V, params, *, matmul_dtype=jnp.bfloat16,
                     out_dtype=jnp.float32, tm_max=None, donate_u=False):
    """H, U, V: (N, D). Returns LayerNorm((1-Z)*U + Z*V) as (N, D) out_dtype."""
    N, D = H.shape
    E = params["w1"].shape[1]

    vmem_cap = _vmem_capacity_bytes()
    if tm_max is None:
        # 128 MiB parts (v5e/v6e) take bigger row tiles; 256 for v7x (64 MiB).
        tm_max = 512 if vmem_cap >= (100 << 20) else 256

    d_pad = _round_up(D, _LANE)        # lane-dense features (unmasked vst)
    e_pad = _round_up(E, _LANE)
    tm = _choose_tm(N, tm_max)
    n_pad = _round_up(max(N, _SUBLANE), tm)

    f32 = jnp.float32
    # H streamed in matmul dtype (halves its DMA bytes when bf16); U/V stay f32
    # for the exact f32 gate. _pad2 is a no-op (no copy) for aligned shapes.
    Hp = _pad2(H.astype(matmul_dtype), n_pad, d_pad)
    Up = _pad2(U.astype(f32), n_pad, d_pad)
    Vp = _pad2(V.astype(f32), n_pad, d_pad)
    w1 = _pad2(params["w1"].astype(f32), d_pad, e_pad).astype(matmul_dtype)
    w2 = _pad2(params["w2"].astype(f32), e_pad, d_pad).astype(matmul_dtype)
    b1 = _pad2(params["b1"].astype(f32), 1, e_pad)
    b2 = _pad2(params["b2"].astype(f32), 1, d_pad)
    gamma = _pad2(params["gamma"].astype(f32), 1, d_pad)
    beta = _pad2(params["beta"].astype(f32), 1, d_pad)

    # Tight VMEM budget (single count; double-buffering already included per
    # term) capped at 3/4 of physical VMEM (≈48 MiB on v7x, 96 MiB on v6e).
    w_item = jnp.dtype(matmul_dtype).itemsize
    o_item = jnp.dtype(out_dtype).itemsize
    weight_bytes = 2 * d_pad * e_pad * w_item + (e_pad + 3 * d_pad) * 4
    tile_bytes = 2 * tm * d_pad * (w_item + 2 * 4 + o_item)   # H,U,V,out x2 bufs
    work_bytes = 4 * tm * max(e_pad, d_pad) * 4               # z1/z live ranges
    vmem_need = 2 * weight_bytes + tile_bytes + work_bytes + (4 << 20)
    vmem_limit = int(min(max(vmem_need, 16 << 20), (vmem_cap * 3) // 4))

    cost = pl.CostEstimate(
        flops=int(4 * n_pad * d_pad * e_pad + 12 * n_pad * d_pad),
        transcendentals=int(n_pad),                # one rsqrt per row
        bytes_accessed=int(n_pad * d_pad * (w_item + 2 * 4 + o_item)
                           + weight_bytes),
    )

    kernel = _make_kernel(D)
    row_spec_in = pl.BlockSpec((tm, d_pad), lambda i: (i, 0))
    aliases = {1: 0} if (donate_u and out_dtype == jnp.float32) else {}

    def _build(single_buffer_consts):
        if single_buffer_consts:
            # Grid-invariant operands don't need double-buffering.
            def const_spec(shape):
                return pl.BlockSpec(shape, lambda i: (0, 0),
                                    pipeline_mode=pl.Buffered(1))
        else:
            def const_spec(shape):
                return pl.BlockSpec(shape, lambda i: (0, 0))

        return pl.pallas_call(
            kernel,
            out_shape=jax.ShapeDtypeStruct((n_pad, d_pad), out_dtype),
            grid_spec=pltpu.PrefetchScalarGridSpec(
                num_scalar_prefetch=0,
                grid=(n_pad // tm,),
                in_specs=[
                    row_spec_in, row_spec_in, row_spec_in,   # H, U, V row tiles
                    const_spec((d_pad, e_pad)),              # W1
                    const_spec((1, e_pad)),                  # b1
                    const_spec((e_pad, d_pad)),              # W2
                    const_spec((1, d_pad)),                  # b2
                    const_spec((1, d_pad)),                  # gamma
                    const_spec((1, d_pad)),                  # beta
                ],
                out_specs=pl.BlockSpec((tm, d_pad), lambda i: (i, 0)),
            ),
            compiler_params=pltpu.CompilerParams(
                dimension_semantics=("parallel",),
                vmem_limit_bytes=vmem_limit),
            cost_estimate=cost,
            input_output_aliases=aliases,
        )

    args = (Hp, Up, Vp, w1, b1, w2, b2, gamma, beta)
    out = None
    if hasattr(pl, "Buffered"):
        try:
            out = _build(True)(*args)
        except _PIPELINE_FALLBACK_ERRORS:
            # Narrow fallback for builds where pipeline_mode / Buffered(1) is
            # unsupported; genuine kernel bugs re-raise from the path below.
            out = None
    if out is None:
        out = _build(False)(*args)
    return out[:N, :D]


def init_params(key, num_input, expansion_factor=2):
    D = num_input
    E = expansion_factor * D
    k1, k2, k3, k4 = jax.random.split(key, 4)
    lim1 = 1.0 / jnp.sqrt(D)   # nn.Linear default: U(-1/sqrt(fan_in), ...)
    lim2 = 1.0 / jnp.sqrt(E)
    return {
        "w1": jax.random.uniform(k1, (D, E), jnp.float32, -lim1, lim1),
        "b1": jax.random.uniform(k2, (1, E), jnp.float32, -lim1, lim1),
        "w2": jax.random.uniform(k3, (E, D), jnp.float32, -lim2, lim2),
        "b2": jax.random.uniform(k4, (1, D), jnp.float32, -lim2, lim2),
        "gamma": jnp.ones((1, D), jnp.float32),    # LayerNorm weight init
        "beta": jnp.zeros((1, D), jnp.float32),    # LayerNorm bias init
    }


def reference_forward(H, U, V, p, matmul_dtype=jnp.float32):
    """Pure-JAX reference.  matmul_dtype=f32 == exact PyTorch ResBlock forward;
    bf16 mimics the kernel's MXU operand casts (f32 accumulation)."""
    z1 = jnp.dot(H.astype(matmul_dtype), p["w1"].astype(matmul_dtype),
                 preferred_element_type=jnp.float32) + p["b1"]
    z1 = jnp.maximum(z1, 0.0)
    z = jnp.dot(z1.astype(matmul_dtype), p["w2"].astype(matmul_dtype),
                preferred_element_type=jnp.float32) + p["b2"]
    z = jnp.maximum(z, 0.0)
    out = (1.0 - z) * U + z * V
    mean = jnp.mean(out, axis=-1, keepdims=True)
    var = jnp.mean((out - mean) ** 2, axis=-1, keepdims=True)
    return (out - mean) / jnp.sqrt(var + EPS) * p["gamma"] + p["beta"]


if __name__ == "__main__":
    key = jax.random.PRNGKey(0)

    # Shapes implied by the module: hidden=num_input=32, expansion_factor=2,
    # batch=2, seq=8  ->  H/U/V are (batch*seq, 32) = (16, 32).
    D = 32
    batch, seq = 2, 8
    N = batch * seq

    kh, ku, kv, kp, krest = jax.random.split(key, 5)
    H = jax.random.normal(kh, (N, D), jnp.float32)
    U = jax.random.normal(ku, (N, D), jnp.float32)
    V = jax.random.normal(kv, (N, D), jnp.float32)
    params = init_params(kp, D, expansion_factor=2)

    # 1) Exact path: f32 matmuls + f32 epilogue (exercises feature padding and
    #    the maskless LayerNorm stats).
    out_f32 = jax.block_until_ready(
        resblock_forward(H, U, V, params, matmul_dtype=jnp.float32))
    ref_f32 = reference_forward(H, U, V, params)
    assert out_f32.shape == (N, D)
    assert jnp.allclose(out_f32, ref_f32, atol=1e-4, rtol=1e-4), "f32 mismatch"

    # 2) Default path: bf16 MXU operands (H, W1, W2), f32 accumulation/epilogue.
    out_bf16 = jax.block_until_ready(resblock_forward(H, U, V, params))
    ref_bf16 = reference_forward(H, U, V, params, matmul_dtype=jnp.bfloat16)
    assert jnp.allclose(out_bf16, ref_bf16, atol=2e-2, rtol=2e-2), "bf16 mismatch"

    # 3) Lane/sublane-aligned shape with a multi-step grid (no padding copies).
    D2, N2 = 128, 1024
    kh2, ku2, kv2, kp2 = jax.random.split(krest, 4)
    H2 = jax.random.normal(kh2, (N2, D2), jnp.float32)
    U2 = jax.random.normal(ku2, (N2, D2), jnp.float32)
    V2 = jax.random.normal(kv2, (N2, D2), jnp.float32)
    params2 = init_params(kp2, D2, expansion_factor=2)
    out2 = jax.block_until_ready(
        resblock_forward(H2, U2, V2, params2, matmul_dtype=jnp.float32))
    ref2 = reference_forward(H2, U2, V2, params2)
    assert jnp.allclose(out2, ref2, atol=1e-4, rtol=1e-4), "aligned mismatch"

    # 4) Ragged N (not a multiple of 8) + odd D: exercises row + column padding.
    D3, N3 = 40, 50
    kh3, ku3, kv3, kp3 = jax.random.split(jax.random.fold_in(krest, 1), 4)
    H3 = jax.random.normal(kh3, (N3, D3), jnp.float32)
    U3 = jax.random.normal(ku3, (N3, D3), jnp.float32)
    V3 = jax.random.normal(kv3, (N3, D3), jnp.float32)
    params3 = init_params(kp3, D3, expansion_factor=2)
    out3 = jax.block_until_ready(
        resblock_forward(H3, U3, V3, params3, matmul_dtype=jnp.float32))
    ref3 = reference_forward(H3, U3, V3, params3)
    assert out3.shape == (N3, D3)
    assert jnp.allclose(out3, ref3, atol=1e-4, rtol=1e-4), "ragged mismatch"

    print("KERNEL_OK")
</pallas_src>

<mosaic_0001>
module attributes {stable_mosaic.version = 11 : i64} {
  func.func @kernel(%arg0: i32, %arg1: memref<16x128xf32, #tpu.memory_space<vmem>>, %arg2: memref<16x128xf32, #tpu.memory_space<vmem>>, %arg3: memref<16x128xf32, #tpu.memory_space<vmem>>, %arg4: memref<128x128xf32, #tpu.memory_space<vmem>>, %arg5: memref<1x128xf32, #tpu.memory_space<vmem>>, %arg6: memref<128x128xf32, #tpu.memory_space<vmem>>, %arg7: memref<1x128xf32, #tpu.memory_space<vmem>>, %arg8: memref<1x128xf32, #tpu.memory_space<vmem>>, %arg9: memref<1x128xf32, #tpu.memory_space<vmem>>, %arg10: memref<16x128xf32, #tpu.memory_space<vmem>>) attributes {dimension_semantics = [#tpu.dimension_semantics<parallel>], iteration_bounds = array<i64: 1>, scalar_prefetch = 0 : i64, scratch_operands = 0 : i64, tpu.core_type = #tpu.core_type<tc>, window_params = [{transform_indices = @transform_0, window_bounds = array<i64: 16, 128>}, {transform_indices = @transform_1, window_bounds = array<i64: 16, 128>}, {transform_indices = @transform_2, window_bounds = array<i64: 16, 128>}, {pipeline_mode = #tpu.pipeline_mode<synchronous>, transform_indices = @transform_3, window_bounds = array<i64: 128, 128>}, {pipeline_mode = #tpu.pipeline_mode<synchronous>, transform_indices = @transform_4, window_bounds = array<i64: 1, 128>}, {pipeline_mode = #tpu.pipeline_mode<synchronous>, transform_indices = @transform_5, window_bounds = array<i64: 128, 128>}, {pipeline_mode = #tpu.pipeline_mode<synchronous>, transform_indices = @transform_6, window_bounds = array<i64: 1, 128>}, {pipeline_mode = #tpu.pipeline_mode<synchronous>, transform_indices = @transform_7, window_bounds = array<i64: 1, 128>}, {pipeline_mode = #tpu.pipeline_mode<synchronous>, transform_indices = @transform_8, window_bounds = array<i64: 1, 128>}, {transform_indices = @transform_9, window_bounds = array<i64: 16, 128>}]} {
    %c0 = arith.constant 0 : index
    %c0_0 = arith.constant 0 : index
    %0 = vector.load %arg5[%c0, %c0_0] : memref<1x128xf32, #tpu.memory_space<vmem>>, vector<1x128xf32>
    %c0_1 = arith.constant 0 : index
    %c0_2 = arith.constant 0 : index
    %1 = vector.load %arg7[%c0_1, %c0_2] : memref<1x128xf32, #tpu.memory_space<vmem>>, vector<1x128xf32>
    %c0_3 = arith.constant 0 : index
    %c0_4 = arith.constant 0 : index
    %2 = vector.load %arg8[%c0_3, %c0_4] : memref<1x128xf32, #tpu.memory_space<vmem>>, vector<1x128xf32>
    %c0_5 = arith.constant 0 : index
    %c0_6 = arith.constant 0 : index
    %3 = vector.load %arg9[%c0_5, %c0_6] : memref<1x128xf32, #tpu.memory_space<vmem>>, vector<1x128xf32>
    %c0_7 = arith.constant 0 : index
    %c0_8 = arith.constant 0 : index
    %4 = vector.load %arg1[%c0_7, %c0_8] : memref<16x128xf32, #tpu.memory_space<vmem>>, vector<16x128xf32>
    %c0_9 = arith.constant 0 : index
    %c0_10 = arith.constant 0 : index
    %5 = vector.load %arg4[%c0_9, %c0_10] : memref<128x128xf32, #tpu.memory_space<vmem>>, vector<128x128xf32>
    %cst = arith.constant dense<0.000000e+00> : vector<16x128xf32>
    %6 = tpu.matmul %4, %5, %cst {dimension_numbers = #tpu.dot_dimension_numbers<[1], [0], [0], [1], [0, 0, 1, 1], [], []>} : vector<16x128xf32>, vector<128x128xf32>, vector<16x128xf32> -> vector<16x128xf32>
    %7 = vector.broadcast %0 : vector<1x128xf32> to vector<16x128xf32>
    %8 = arith.addf %6, %7 : vector<16x128xf32>
    %cst_11 = arith.constant 0.000000e+00 : f32
    %9 = vector.broadcast %cst_11 : f32 to vector<16x128xf32>
    %10 = arith.maximumf %8, %9 : vector<16x128xf32>
    %c0_12 = arith.constant 0 : index
    %c0_13 = arith.constant 0 : index
    %11 = vector.load %arg6[%c0_12, %c0_13] : memref<128x128xf32, #tpu.memory_space<vmem>>, vector<128x128xf32>
    %cst_14 = arith.constant dense<0.000000e+00> : vector<16x128xf32>
    %12 = tpu.matmul %10, %11, %cst_14 {dimension_numbers = #tpu.dot_dimension_numbers<[1], [0], [0], [1], [0, 0, 1, 1], [], []>} : vector<16x128xf32>, vector<128x128xf32>, vector<16x128xf32> -> vector<16x128xf32>
    %13 = vector.broadcast %1 : vector<1x128xf32> to vector<16x128xf32>
    %14 = arith.addf %12, %13 : vector<16x128xf32>
    %cst_15 = arith.constant 0.000000e+00 : f32
    %15 = vector.broadcast %cst_15 : f32 to vector<16x128xf32>
    %16 = arith.maximumf %14, %15 : vector<16x128xf32>
    %cst_16 = arith.constant 1.000000e+00 : f32
    %17 = vector.broadcast %cst_16 : f32 to vector<16x128xf32>
    %18 = arith.subf %17, %16 : vector<16x128xf32>
    %c0_17 = arith.constant 0 : index
    %c0_18 = arith.constant 0 : index
    %19 = vector.load %arg2[%c0_17, %c0_18] : memref<16x128xf32, #tpu.memory_space<vmem>>, vector<16x128xf32>
    %20 = arith.mulf %18, %19 : vector<16x128xf32>
    %c0_19 = arith.constant 0 : index
    %c0_20 = arith.constant 0 : index
    %21 = vector.load %arg3[%c0_19, %c0_20] : memref<16x128xf32, #tpu.memory_space<vmem>>, vector<16x128xf32>
    %22 = arith.mulf %16, %21 : vector<16x128xf32>
    %23 = arith.addf %20, %22 : vector<16x128xf32>
    %cst_21 = arith.constant dense<0.000000e+00> : vector<16xf32>
    %24 = vector.multi_reduction <add>, %23, %cst_21 [1] : vector<16x128xf32> to vector<16xf32>
    %25 = vector.shape_cast %24 : vector<16xf32> to vector<16x1xf32>
    %cst_22 = arith.constant 3.125000e-02 : f32
    %26 = vector.broadcast %cst_22 : f32 to vector<16x1xf32>
    %27 = arith.mulf %25, %26 : vector<16x1xf32>
    %28 = arith.mulf %23, %23 : vector<16x128xf32>
    %cst_23 = arith.constant dense<0.000000e+00> : vector<16xf32>
    %29 = vector.multi_reduction <add>, %28, %cst_23 [1] : vector<16x128xf32> to vector<16xf32>
    %30 = vector.shape_cast %29 : vector<16xf32> to vector<16x1xf32>
    %cst_24 = arith.constant 3.125000e-02 : f32
    %31 = vector.broadcast %cst_24 : f32 to vector<16x1xf32>
    %32 = arith.mulf %30, %31 : vector<16x1xf32>
    %33 = arith.mulf %27, %27 : vector<16x1xf32>
    %34 = arith.subf %32, %33 : vector<16x1xf32>
    %cst_25 = arith.constant 0.000000e+00 : f32
    %35 = vector.broadcast %cst_25 : f32 to vector<16x1xf32>
    %36 = arith.maximumf %34, %35 : vector<16x1xf32>
    %37 = vector.broadcast %27 : vector<16x1xf32> to vector<16x128xf32>
    %38 = arith.subf %23, %37 : vector<16x128xf32>
    %cst_26 = arith.constant 9.99999974E-6 : f32
    %39 = vector.broadcast %cst_26 : f32 to vector<16x1xf32>
    %40 = arith.addf %36, %39 : vector<16x1xf32>
    %41 = math.rsqrt %40 : vector<16x1xf32>
    %42 = vector.broadcast %41 : vector<16x1xf32> to vector<16x128xf32>
    %43 = arith.mulf %38, %42 : vector<16x128xf32>
    %44 = vector.broadcast %2 : vector<1x128xf32> to vector<16x128xf32>
    %45 = arith.mulf %43, %44 : vector<16x128xf32>
    %46 = vector.broadcast %3 : vector<1x128xf32> to vector<16x128xf32>
    %47 = arith.addf %45, %46 : vector<16x128xf32>
    %c0_27 = arith.constant 0 : index
    %c0_28 = arith.constant 0 : index
    %48 = vector.load %arg10[%c0_27, %c0_28] : memref<16x128xf32, #tpu.memory_space<vmem>>, vector<16x128xf32>
    tpu.vector_store %arg10[%c0_27, %c0_28], %47 {strides = array<i32>} : memref<16x128xf32, #tpu.memory_space<vmem>>, vector<16x128xf32>,
    return
  }
  func.func @transform_0(%arg0: i32) -> (i32, i32) {
    %c0_i32 = arith.constant 0 : i32
    %c0_i32_0 = arith.constant 0 : i32
    return %arg0, %c0_i32 : i32, i32
  }
  func.func @transform_1(%arg0: i32) -> (i32, i32) {
    %c0_i32 = arith.constant 0 : i32
    %c0_i32_0 = arith.constant 0 : i32
    return %arg0, %c0_i32 : i32, i32
  }
  func.func @transform_2(%arg0: i32) -> (i32, i32) {
    %c0_i32 = arith.constant 0 : i32
    %c0_i32_0 = arith.constant 0 : i32
    return %arg0, %c0_i32 : i32, i32
  }
  func.func @transform_3(%arg0: i32) -> (i32, i32) {
    %c0_i32 = arith.constant 0 : i32
    %c0_i32_0 = arith.constant 0 : i32
    %c0_i32_1 = arith.constant 0 : i32
    return %c0_i32, %c0_i32_0 : i32, i32
  }
  func.func @transform_4(%arg0: i32) -> (i32, i32) {
    %c0_i32 = arith.constant 0 : i32
    %c0_i32_0 = arith.constant 0 : i32
    %c0_i32_1 = arith.constant 0 : i32
    return %c0_i32, %c0_i32_0 : i32, i32
  }
  func.func @transform_5(%arg0: i32) -> (i32, i32) {
    %c0_i32 = arith.constant 0 : i32
    %c0_i32_0 = arith.constant 0 : i32
    %c0_i32_1 = arith.constant 0 : i32
    return %c0_i32, %c0_i32_0 : i32, i32
  }
  func.func @transform_6(%arg0: i32) -> (i32, i32) {
    %c0_i32 = arith.constant 0 : i32
    %c0_i32_0 = arith.constant 0 : i32
    %c0_i32_1 = arith.constant 0 : i32
    return %c0_i32, %c0_i32_0 : i32, i32
  }
  func.func @transform_7(%arg0: i32) -> (i32, i32) {
    %c0_i32 = arith.constant 0 : i32
    %c0_i32_0 = arith.constant 0 : i32
    %c0_i32_1 = arith.constant 0 : i32
    return %c0_i32, %c0_i32_0 : i32, i32
  }
  func.func @transform_8(%arg0: i32) -> (i32, i32) {
    %c0_i32 = arith.constant 0 : i32
    %c0_i32_0 = arith.constant 0 : i32
    %c0_i32_1 = arith.constant 0 : i32
    return %c0_i32, %c0_i32_0 : i32, i32
  }
  func.func @transform_9(%arg0: i32) -> (i32, i32) {
    %c0_i32 = arith.constant 0 : i32
    %c0_i32_0 = arith.constant 0 : i32
    return %arg0, %c0_i32 : i32, i32
  }
}

</mosaic_0001>

<bundles_post_ra>
// kernel: tpu_custom_call.1
= control target key start
LH: loop header
LB: loop body
LE: loop exit
PB: predicated region body
PF: predicated region fallthrough
CT: control target
= control target key end

     0   :  { %14 = vsyncpa [#allocation3], 0  ;;  %s882_s0 = inlined_call_operand.hbm [shape: f32[16,128], index: 0, kind: input, shape index: {}]   ;;  %s883_s1 = inlined_call_operand.hbm [shape: f32[16,128], index: 1, kind: input, shape index: {}]   ;;  %s884_s2 = inlined_call_operand.hbm [shape: f32[16,128], index: 2, kind: input, shape index: {}]   ;;  %s885_s3 = inlined_call_operand.hbm [shape: f32[128,128], index: 3, kind: input, shape index: {}]   ;;  %s886_s4 = inlined_call_operand.vmem [shape: f32[1,128], index: 4, kind: input, shape index: {}]   ;;  %s887_s5 = inlined_call_operand.hbm [shape: f32[128,128], index: 5, kind: input, shape index: {}]   ;;  %s888_s6 = inlined_call_operand.vmem [shape: f32[1,128], index: 6, kind: input, shape index: {}]   ;;  %s889_s7 = inlined_call_operand.vmem [shape: f32[1,128], index: 7, kind: input, shape index: {}]   ;;  %s890_s8 = inlined_call_operand.vmem [shape: f32[1,128], index: 8, kind: input, shape index: {}]   ;;  %s891_s9 = inlined_call_operand.hbm [shape: f32[16,128], index: 9, kind: output, shape index: {}]  }
   0x1   :  { %15 = vsyncpa [#allocation6], 0 }
   0x2   :  { %16 = vsyncpa [#allocation9], 0 }
   0x3   :  { %17 = vsyncpa [#allocation4], 0  ;;  %s708_s30 = smov [#allocation5]   ;;  %s709_s11 = smov [#allocation8]  }
   0x4   :  { %s35_s10 = sshll.u32 %s708_s30, 4  ;;  %s59_s12 = sshll.u32 %s709_s11, 4  ;;  %s36_s10 = int_to_ptr.vmem [resolvable:$true] %s35_s10  ;;  %s766_s12 = int_to_ptr.vmem [resolvable:$true] %s59_s12 }
   0x5   :  { %s568_s15 = scalar_lea.hbm %s883_s1, 256 }
   0x6   :  { %p569_p0 = scmp.ne.s32.totalorder %s883_s1, %s568_s15  ;;  %p572_p1 = scmp.lt.u32.totalorder %s568_s15, %s883_s1 }
   0x8   :  { %p574_p2 = pnand %p572_p1, %p569_p0 }
   0xa   :  { %577 = shalt.err (!%p574_p2)
}
   0xb   :  { %s578_s20 = scalar_lea.vmem %s36_s10, 256  ;;  %p583_p4 = scmp.lt.s32.totalorder %s36_s10, %s36_s10 }
   0xc   :  { %p579_p3 = scmp.ne.s32.totalorder %s36_s10, %s578_s20  ;;  %p584_p5 = scmp.lt.s32.totalorder %s578_s20, %s578_s20 }
   0xe   :  { %p585_p6 = por %p584_p5, %p583_p4 }
  0x10   :  { %p586_p7 = pnand %p585_p6, %p579_p3 }
  0x12   :  { %589 = shalt.err (!%p586_p7)
}
  0x13   :  { %s710_s21 = smov 128   ;;  %s711_s22 = smov 8  }
  0x14   :  { %41 = dma.hbm_to_vmem [thread:$0]  %s883_s1, 256, %s36_s10, [#allocation6], %s710_s21, %s710_s21, %s711_s22  }
  0x15   :  { %s590_s27 = scalar_lea.hbm %s885_s3, 2048 }
  0x16   :  { %p591_p8 = scmp.ne.s32.totalorder %s885_s3, %s590_s27  ;;  %p594_p9 = scmp.lt.u32.totalorder %s590_s27, %s885_s3 }
  0x18   :  { %p596_p10 = pnand %p594_p9, %p591_p8 }
  0x1a   :  { %599 = shalt.err (!%p596_p10)
}
  0x1b   :  { %s600_s13 = scalar_lea.vmem %s766_s12, 2048  ;;  %p605_p12 = scmp.lt.s32.totalorder %s766_s12, %s766_s12 }
  0x1c   :  { %p601_p11 = scmp.ne.s32.totalorder %s766_s12, %s600_s13  ;;  %p606_p13 = scmp.lt.s32.totalorder %s600_s13, %s600_s13 }
  0x1e   :  { %p607_p0 = por %p606_p13, %p605_p12 }
  0x20   :  { %p608_p1 = pnand %p607_p0, %p601_p11 }
  0x22   :  { %611 = shalt.err (!%p608_p1)
}
  0x23   :  { %65 = dma.hbm_to_vmem [thread:$0]  %s885_s3, 2048, %s766_s12, [#allocation9], %s710_s21, %s710_s21, %s711_s22  }
  0x24   :  { %s712_s14 = smov [#allocation2]   ;;  %s713_s16 = smov [#allocation7]  }
  0x25   :  { %s23_s15 = sshll.u32 %s712_s14, 4  ;;  %s47_s17 = sshll.u32 %s713_s16, 4  ;;  %s24_s15 = int_to_ptr.vmem [resolvable:$true] %s23_s15  ;;  %s803_s17 = int_to_ptr.vmem [resolvable:$true] %s47_s17 }
  0x26   :  { %s612_s20 = scalar_lea.hbm %s882_s0, 256 }
  0x27   :  { %p613_p2 = scmp.ne.s32.totalorder %s882_s0, %s612_s20  ;;  %p616_p3 = scmp.lt.u32.totalorder %s612_s20, %s882_s0 }
  0x29   :  { %p618_p4 = pnand %p616_p3, %p613_p2 }
  0x2b   :  { %621 = shalt.err (!%p618_p4)
}
  0x2c   :  { %s622_s3 = scalar_lea.vmem %s24_s15, 256  ;;  %p627_p6 = scmp.lt.s32.totalorder %s24_s15, %s24_s15 }
  0x2d   :  { %p623_p5 = scmp.ne.s32.totalorder %s24_s15, %s622_s3  ;;  %p628_p7 = scmp.lt.s32.totalorder %s622_s3, %s622_s3 }
  0x2f   :  { %p629_p8 = por %p628_p7, %p627_p6 }
  0x31   :  { %p630_p9 = pnand %p629_p8, %p623_p5 }
  0x33   :  { %633 = shalt.err (!%p630_p9)
}
  0x34   :  { %29 = dma.hbm_to_vmem [thread:$0]  %s882_s0, 256, %s24_s15, [#allocation3], %s710_s21, %s710_s21, %s711_s22  }
  0x35   :  { %s634_s30 = scalar_lea.hbm %s884_s2, 256 }
  0x36   :  { %p635_p10 = scmp.ne.s32.totalorder %s884_s2, %s634_s30  ;;  %p638_p11 = scmp.lt.u32.totalorder %s634_s30, %s884_s2 }
  0x38   :  { %p640_p12 = pnand %p638_p11, %p635_p10 }
  0x3a   :  { %643 = shalt.err (!%p640_p12)
}
  0x3b   :  { %s644_s14 = scalar_lea.vmem %s803_s17, 256  ;;  %p649_p0 = scmp.lt.s32.totalorder %s803_s17, %s803_s17 }
  0x3c   :  { %p645_p13 = scmp.ne.s32.totalorder %s803_s17, %s644_s14  ;;  %p650_p1 = scmp.lt.s32.totalorder %s644_s14, %s644_s14 }
  0x3e   :  { %p651_p2 = por %p650_p1, %p649_p0 }
  0x40   :  { %p652_p3 = pnand %p651_p2, %p645_p13 }
  0x42   :  { %655 = shalt.err (!%p652_p3)
}
  0x43   :  { %53 = dma.hbm_to_vmem [thread:$0]  %s884_s2, 256, %s803_s17, [#allocation6], %s710_s21, %s710_s21, %s711_s22  }
  0x44   :  { %s714_s16 = smov [#allocation10]   ;;  %s656_s23 = scalar_lea.hbm %s887_s5, 2048 }
  0x45   :  { %s73_s18 = sshll.u32 %s714_s16, 4  ;;  %p657_p4 = scmp.ne.s32.totalorder %s887_s5, %s656_s23  ;;  %s74_s18 = int_to_ptr.vmem [resolvable:$true] %s73_s18 }
  0x46   :  { %p660_p5 = scmp.lt.u32.totalorder %s656_s23, %s887_s5 }
  0x48   :  { %p662_p6 = pnand %p660_p5, %p657_p4 }
  0x4a   :  { %665 = shalt.err (!%p662_p6)
}
  0x4b   :  { %s666_s12 = scalar_lea.vmem %s74_s18, 2048  ;;  %p671_p8 = scmp.lt.s32.totalorder %s74_s18, %s74_s18 }
  0x4c   :  { %p667_p7 = scmp.ne.s32.totalorder %s74_s18, %s666_s12  ;;  %p672_p9 = scmp.lt.s32.totalorder %s666_s12, %s666_s12 }
  0x4e   :  { %p673_p10 = por %p672_p9, %p671_p8 }
  0x50   :  { %p674_p11 = pnand %p673_p10, %p667_p7 }
  0x52   :  { %677 = shalt.err (!%p674_p11)
}
  0x53   :  { %79 = dma.hbm_to_vmem [thread:$0]  %s887_s5, 2048, %s74_s18, [#allocation9], %s710_s21, %s710_s21, %s711_s22  }
  0x54   :  { %700 = dma.done.wait [#allocation3], 256  }
  0x55   :  { %701 = vsyncadd [#allocation3], 4294967040 }
  0x56   :  { %702 = dma.done.wait [#allocation6], 512  }
  0x57   :  { %703 = vsyncadd [#allocation6], 4294966784 }
  0x58   :  { %704 = dma.done.wait [#allocation9], 4096  }
  0x59   :  { %705 = vsyncadd [#allocation9], 4294963200  ;;  %v107_v0 = vld [vmem:[#allocation8] sm:$0xff]  ;;  %v108_v1 = vld [vmem:[#allocation8 + $0x8] sm:$0xff]  ;;  %s715_s13 = smov [#allocation11]  }
  0x5a   :  { %v109_v2 = vld [vmem:[#allocation8 + $0x10] sm:$0xff]  ;;  %v492_v3 = vpack.c.bf16 %v108_v1, %v107_v0  ;;  %v110_v4 = vld [vmem:[#allocation8 + $0x18] sm:$0xff]  ;;  %v111_v6 = vld [vmem:[#allocation8 + $0x20] sm:$0xff]  ;;  %s368_s1 = sshll.u32 %s715_s13, 4  ;;  %s369_s1 = int_to_ptr.vmem [resolvable:$true] %s368_s1 }
  0x5b   :  { %v496_v5 = vpack.c.bf16 %v110_v4, %v109_v2  ;;  %v112_v7 = vld [vmem:[#allocation8 + $0x28] sm:$0xff]  ;;  %v113_v9 = vld [vmem:[#allocation8 + $0x30] sm:$0xff]  ;;  %v114_v10 = vld [vmem:[#allocation8 + $0x38] sm:$0xff]  ;;  %s678_s10 = scalar_lea.vmem %s369_s1, 256  ;;  %p683_p13 = scmp.lt.s32.totalorder %s369_s1, %s369_s1 }
  0x5c   :  { %493 = vmatprep.subr.bf16.mxu0 %v492_v3  ;;  %v500_v8 = vpack.c.bf16 %v112_v7, %v111_v6  ;;  %v105_v11 = vld [vmem:[#allocation2] sm:$0xff]  ;;  %v206_v12 = vld [vmem:[#allocation10] sm:$0xff]  ;;  %v207_v13 = vld [vmem:[#allocation10 + $0x8] sm:$0xff]  ;;  %v504_v20 = vpack.c.bf16 %v114_v10, %v113_v9  ;;  %p679_p12 = scmp.ne.s32.totalorder %s369_s1, %s678_s10  ;;  %p684_p0 = scmp.lt.s32.totalorder %s678_s10, %s678_s10 }
  0x5d   :  { %495 = vmatpush3.bf16.msra.mxu0 %v492_v3  ;;  %454 = vmatprep.mubr.f32.mxu0 %v105_v11  ;;  %v208_v14 = vld [vmem:[#allocation10 + $0x10] sm:$0xff]  ;;  %v524_v15 = vpack.c.bf16 %v207_v13, %v206_v12  ;;  %v209_v16 = vld [vmem:[#allocation10 + $0x18] sm:$0xff]  ;;  %v210_v18 = vld [vmem:[#allocation10 + $0x20] sm:$0xff] }
  0x5e   :  { %497 = vmatprep.subr.bf16.mxu0 %v496_v5  ;;  %v528_v17 = vpack.c.bf16 %v209_v16, %v208_v14  ;;  %v211_v19 = vld [vmem:[#allocation10 + $0x28] sm:$0xff]  ;;  %v115_v21 = vld [vmem:[#allocation8 + $0x40] sm:$0xff]  ;;  %v212_v24 = vld [vmem:[#allocation10 + $0x30] sm:$0xff]  ;;  %p685_p1 = por %p684_p0, %p683_p13 }
  0x5f   :  { %525 = vmatprep.subr.bf16.mxu1 %v524_v15  ;;  %v116_v22 = vld [vmem:[#allocation8 + $0x48] sm:$0xff]  ;;  %v532_v23 = vpack.c.bf16 %v211_v19, %v210_v18  ;;  %v213_v25 = vld [vmem:[#allocation10 + $0x38] sm:$0xff]  ;;  %v117_v27 = vld [vmem:[#allocation8 + $0x50] sm:$0xff] }
  0x60   :  { %527 = vmatpush3.bf16.msra.mxu1 %v524_v15  ;;  %v508_v26 = vpack.c.bf16 %v116_v22, %v115_v21  ;;  %v118_v28 = vld [vmem:[#allocation8 + $0x58] sm:$0xff]  ;;  %v536_v29 = vpack.c.bf16 %v213_v25, %v212_v24  ;;  %v214_v30 = vld [vmem:[#allocation10 + $0x40] sm:$0xff]  ;;  %v215_v31 = vld [vmem:[#allocation10 + $0x48] sm:$0xff]  ;;  %p686_p2 = pnand %p685_p1, %p679_p12 }
  0x61   :  { %499 = vmatpush3.bf16.msra.mxu0 %v496_v5  ;;  %529 = vmatprep.subr.bf16.mxu1 %v528_v17  ;;  %v512_v32 = vpack.c.bf16 %v118_v28, %v117_v27  ;;  %v119_v33 = vld [vmem:[#allocation8 + $0x60] sm:$0xff]  ;;  %v120_v34 = vld [vmem:[#allocation8 + $0x68] sm:$0xff]  ;;  %v540_v35 = vpack.c.bf16 %v215_v31, %v214_v30  ;;  %v216_v36 = vld [vmem:[#allocation10 + $0x50] sm:$0xff] }
  0x62   :  { %501 = vmatprep.subr.bf16.mxu0 %v500_v8  ;;  %v217_v37 = vld [vmem:[#allocation10 + $0x58] sm:$0xff]  ;;  %v516_v38 = vpack.c.bf16 %v120_v34, %v119_v33  ;;  %v121_v39 = vld [vmem:[#allocation8 + $0x70] sm:$0xff]  ;;  %v218_v42 = vld [vmem:[#allocation10 + $0x60] sm:$0xff] }
  0x63   :  { %v122_v40 = vld [vmem:[#allocation8 + $0x78] sm:$0xff]  ;;  %v544_v41 = vpack.c.bf16 %v217_v37, %v216_v36  ;;  %v219_v43 = vld [vmem:[#allocation10 + $0x68] sm:$0xff]  ;;  %v220_v47 = vld [vmem:[#allocation10 + $0x70] sm:$0xff] }
  0x64   :  { %531 = vmatpush3.bf16.msra.mxu1 %v528_v17  ;;  %v520_v44 = vpack.c.bf16 %v122_v40, %v121_v39  ;;  %v548_v45 = vpack.c.bf16 %v219_v43, %v218_v42  ;;  %v106_v46 = vld [vmem:[#allocation2 + $0x8] sm:$0xff]  ;;  %v382_v50 = vld [vmem:[%s886_s4] ss:$0 sm:$0xff]  ;;  %v308_v1 = vld [vmem:[#allocation5 + $0x8] sm:$0xff] }
  0x65   :  { %503 = vmatpush3.bf16.msra.mxu0 %v500_v8  ;;  %533 = vmatprep.subr.bf16.mxu1 %v532_v23  ;;  %v221_v48 = vld [vmem:[#allocation10 + $0x78] sm:$0xff]  ;;  %v383_v57 = vld [vmem:[%s888_s6] ss:$0 sm:$0xff]  ;;  %v307_v2 = vld [vmem:[#allocation5] sm:$0xff] }
  0x66   :  { %505 = vmatprep.subr.bf16.mxu0 %v504_v20  ;;  %v552_v49 = vpack.c.bf16 %v221_v48, %v220_v47  ;;  %v311_v3 = vld [vmem:[#allocation7] sm:$0xff]  ;;  %v312_v5 = vld [vmem:[#allocation7 + $0x8] sm:$0xff] }
  0x67   :  { %v385_v34 = vld [vmem:[%s890_s8] ss:$0 sm:$0xff] }
  0x68   :  { %535 = vmatpush3.bf16.msra.mxu1 %v532_v23 }
  0x69   :  { %507 = vmatpush3.bf16.msra.mxu0 %v504_v20  ;;  %537 = vmatprep.subr.bf16.mxu1 %v536_v29 }
  0x6a   :  { %509 = vmatprep.subr.bf16.mxu0 %v508_v26 }
  0x6c   :  { %539 = vmatpush3.bf16.msra.mxu1 %v536_v29 }
  0x6d   :  { %511 = vmatpush3.bf16.msra.mxu0 %v508_v26  ;;  %541 = vmatprep.subr.bf16.mxu1 %v540_v35 }
  0x6e   :  { %513 = vmatprep.subr.bf16.mxu0 %v512_v32 }
  0x70   :  { %543 = vmatpush3.bf16.msra.mxu1 %v540_v35 }
  0x71   :  { %515 = vmatpush3.bf16.msra.mxu0 %v512_v32  ;;  %545 = vmatprep.subr.bf16.mxu1 %v544_v41  ;;  %v384_v32 = vld [vmem:[%s889_s7] ss:$0 sm:$0xff] }
  0x72   :  { %517 = vmatprep.subr.bf16.mxu0 %v516_v38 }
  0x74   :  { %547 = vmatpush3.bf16.msra.mxu1 %v544_v41 }
  0x75   :  { %519 = vmatpush3.bf16.msra.mxu0 %v516_v38  ;;  %549 = vmatprep.subr.bf16.mxu1 %v548_v45 }
  0x76   :  { %521 = vmatprep.subr.bf16.mxu0 %v520_v44 }
  0x78   :  { %551 = vmatpush3.bf16.msra.mxu1 %v548_v45 }
  0x79   :  { %523 = vmatpush3.bf16.msra.mxu0 %v520_v44  ;;  %553 = vmatprep.subr.bf16.mxu1 %v552_v49 }
  0x7c   :  { %455 = vmatmul.mubr.f32.vlgmr.msra.gmra.mrb[0].mxu0 %v106_v46  ;;  %555 = vmatpush3.bf16.msra.mxu1 %v552_v49 }
 0x14f   :  { %v456_v51 = vpop.f32.mrb[0].mxu0 }
 0x150   :  { %v201_v52 = vadd.f32 %v456_v51, %v382_v50  ;;  %v195_v53 = vpop.f32.mrb[1].mxu0 }
 0x151   :  { %v196_v54 = vadd.f32 %v382_v50, %v195_v53 }
 0x152   :  { %v205_v56 = vmax.f32 %v201_v52, 0.0 }
 0x153   :  { %v204_v55 = vmax.f32 %v196_v54, 0.0 }
 0x155   :  { %489 = vmatprep.mubr.f32.mxu1 %v204_v55 }
 0x156   :  { %490 = vmatmul.mubr.f32.vlgmr.msra.gmra.mrb[0].mxu1 %v205_v56 }
 0x229   :  { %v491_v58 = vpop.f32.mrb[0].mxu1 }
 0x22a   :  { %v300_v59 = vadd.f32 %v491_v58, %v383_v57  ;;  %v294_v60 = vpop.f32.mrb[1].mxu1 }
 0x22b   :  { %v295_v61 = vadd.f32 %v383_v57, %v294_v60 }
 0x22c   :  { %v304_v62 = vmax.f32 %v300_v59, 0.0 }
 0x22d   :  { %v303_v63 = vmax.f32 %v295_v61, 0.0 }
 0x22e   :  { %v306_v0 = vsub.f32 1.0, %v304_v62  ;;  %v314_v9 = vmul.f32 %v312_v5, %v304_v62 }
 0x22f   :  { %v305_v4 = vsub.f32 1.0, %v303_v63  ;;  %v313_v8 = vmul.f32 %v311_v3, %v303_v63 }
 0x230   :  { %v310_v6 = vmul.f32 %v308_v1, %v306_v0 }
 0x231   :  { %v309_v7 = vmul.f32 %v307_v2, %v305_v4 }
 0x232   :  { %v316_v12 = vadd.f32 %v314_v9, %v310_v6 }
 0x233   :  { %v315_v10 = vadd.f32 %v313_v8, %v309_v7 }
 0x234   :  { %v324_v13 = vmul.f32 %v316_v12, %v316_v12 }
 0x235   :  { %317 = vadd.xlane.f32.xlu0 %v315_v10  ;;  %v323_v11 = vmul.f32 %v315_v10, %v315_v10 }
 0x237   :  { %325 = vadd.xlane.f32.xlu1 %v323_v11 }
 0x239   :  { %319 = vadd.xlane.f32.xlu0 %v316_v12 }
 0x23b   :  { %327 = vadd.xlane.f32.xlu1 %v324_v13 }
 0x2c2   :  { %v318_v14 = vpop.xlane.xlu0 %317 }
 0x2c3   :  { %v321_v15 = vmul.f32 0.03125, %v318_v14 }
 0x2c4   :  { %v326_v16 = vpop.xlane.xlu1 %325 }
 0x2c5   :  { %v331_v17 = vmul.f32 %v321_v15, %v321_v15  ;;  %v329_v18 = vmul.f32 0.03125, %v326_v16  ;;  %v337_v30 = vsub.f32 %v315_v10, %v321_v15 }
 0x2c6   :  { %v320_v19 = vpop.xlane.xlu0 %319 }
 0x2c7   :  { %v333_v20 = vsub.f32 %v329_v18, %v331_v17  ;;  %v322_v21 = vmul.f32 0.03125, %v320_v19 }
 0x2c8   :  { %v328_v22 = vpop.xlane.xlu1 %327 }
 0x2c9   :  { %v335_v23 = vmax.f32 %v333_v20, 0.0  ;;  %v332_v24 = vmul.f32 %v322_v21, %v322_v21  ;;  %v330_v25 = vmul.f32 0.03125, %v328_v22  ;;  %v338_v35 = vsub.f32 %v316_v12, %v322_v21 }
 0x2cb   :  { %v339_v26 = vadd.f32 1e-05, %v335_v23  ;;  %v334_v27 = vsub.f32 %v330_v25, %v332_v24 }
 0x2cd   :  { %564 = vrsqrt.f32 %v339_v26  ;;  %v336_v28 = vmax.f32 %v334_v27, 0.0 }
 0x2cf   :  { %v340_v29 = vadd.f32 1e-05, %v336_v28 }
 0x2d1   :  { %566 = vrsqrt.f32 %v340_v29 }
 0x2d7   :  { %v565_v31 = vpop.eup %564 }
 0x2d8   :  { %v343_v33 = vmul.f32 %v565_v31, %v337_v30 }
 0x2da   :  { %v351_v36 = vmul.f32 %v384_v32, %v343_v33 }
 0x2db   :  { %v567_v37 = vpop.eup %566 }
 0x2dc   :  { %v344_v38 = vmul.f32 %v567_v37, %v338_v35  ;;  %v359_v39 = vadd.f32 %v385_v34, %v351_v36 }
 0x2de   :  { %v352_v40 = vmul.f32 %v384_v32, %v344_v38  ;;  %361 = vst [vmem:[#allocation11] sm:$0xff] %v359_v39 }
 0x2e0   :  { %v360_v41 = vadd.f32 %v385_v34, %v352_v40 }
 0x2e2   :  { %362 = vst [vmem:[#allocation11 + $0x8] sm:$0xff] %v360_v41 }
 0x2e3   :  { %689 = shalt.err (!%p686_p2)
}
 0x2e4   :  { %s690_s14 = scalar_lea.hbm %s891_s9, 256 }
 0x2e5   :  { %p691_p3 = scmp.ne.s32.totalorder %s891_s9, %s690_s14  ;;  %p694_p4 = scmp.lt.u32.totalorder %s690_s14, %s891_s9 }
 0x2e7   :  { %p696_p5 = pnand %p694_p4, %p691_p3 }
 0x2e9   :  { %699 = shalt.err (!%p696_p5)
}
 0x2ea   :  { %374 = dma.vmem_to_hbm [thread:$0]  %s369_s1, 256, %s891_s9, [#allocation4], %s710_s21, %s710_s21, %s711_s22  }
 0x2eb   :  { %706 = dma.done.wait [#allocation4], 256  }
 0x2ec   :  { %707 = vsyncadd [#allocation4], 4294967040 }
 0x2ed   :  { %378 = vsyncpa [#allocation3], 1 }
 0x2ee   :  { %379 = vsyncpa [#allocation6], 1 }
 0x2ef   :  { %380 = vsyncpa [#allocation9], 1 }
 0x2f0   :  { %381 = vsyncpa [#allocation4], 1 }

</bundles_post_ra>
